<compile_context>
chip_gen: v5e
topology: v5e:2x2
jax: 0.10.0
libtpu: 0.0.40
codegen_flags: <defaults>
</compile_context>

<pallas_src>
import functools

import jax
import jax.numpy as jnp
from jax.experimental import pallas as pl
from jax.experimental.pallas import tpu as pltpu

LANES = 128
MAX_BLOCK_ROWS = 2048     # 2048*128*4B = 1 MiB per input block
NUM_CORES = 2             # leading parallel axis (v7x dual TC); harmless on 1-TC chips


def _wbce_kernel(z_ref, t_ref, w_ref, loss_acc_ref, w_acc_ref, *,
                 block_rows, acc_rows, rows_total, tiles_per_core):
    c = pl.program_id(0)      # core / parallel axis
    i = pl.program_id(1)      # reduction axis (arbitrary)

    @pl.when(i == 0)
    def _():
        loss_acc_ref[...] = jnp.zeros_like(loss_acc_ref)
        w_acc_ref[...] = jnp.zeros_like(w_acc_ref)

    # Unclamped linear block index -> number of valid rows in this block.
    # (Padding / duplicate blocks get valid <= 0 and are fully masked.)
    blk = c * tiles_per_core + i
    valid = rows_total - blk * block_rows
    row_ids = jax.lax.broadcasted_iota(jnp.int32, (block_rows, LANES), 0)
    mask = row_ids < valid

    z = z_ref[...]
    t = t_ref[...]
    w = jnp.where(mask, w_ref[...], 0.0)

    # Factored: w * (clamp(z,0) - z*t + log(1 + exp(-|z|)))   (saves 2 vmuls/elem)
    loss = w * (jnp.maximum(z, 0.0) - z * t
                + jnp.log(1.0 + jnp.exp(-jnp.abs(z))))
    loss = jnp.where(mask, loss, 0.0)   # also kills NaN/Inf from garbage OOB rows

    if block_rows != acc_rows:
        # Partial reduction: (block_rows,128) -> (block_rows/8, 8, 128) -> (8,128)
        # Leading-axis sum = cross-vreg VPU adds (no XLU), keeps accumulators tiny.
        loss = loss.reshape(block_rows // acc_rows, acc_rows, LANES).sum(axis=0)
        w = w.reshape(block_rows // acc_rows, acc_rows, LANES).sum(axis=0)

    loss_acc_ref[...] += loss[None, :, :]
    w_acc_ref[...] += w[None, :, :]


@jax.jit
def weighted_bce_loss_2d(logits, labels, weights):
    assert logits.shape == labels.shape == weights.shape
    n = logits.size

    def flat(x):
        return x.reshape(-1).astype(jnp.float32)

    z, t, w = flat(logits), flat(labels), flat(weights)

    # Lane alignment only: pad (<=127 zeros) iff n % 128 != 0. Zero weights on
    # the pad contribute 0 to numerator and denominator.
    rem = n % LANES
    if rem:
        pad = LANES - rem
        z = jnp.pad(z, (0, pad))
        t = jnp.pad(t, (0, pad))
        w = jnp.pad(w, (0, pad))

    rows_total = z.size // LANES
    z2 = z.reshape(rows_total, LANES)
    t2 = t.reshape(rows_total, LANES)
    w2 = w.reshape(rows_total, LANES)

    if rows_total >= 8:
        block_rows = min(MAX_BLOCK_ROWS, (rows_total // 8) * 8)
    else:
        block_rows = rows_total          # full-dim block (allowed)
    acc_rows = 8 if block_rows % 8 == 0 else block_rows

    num_blocks = pl.cdiv(rows_total, block_rows)
    tiles_per_core = pl.cdiv(num_blocks, NUM_CORES)

    kernel = functools.partial(
        _wbce_kernel,
        block_rows=block_rows,
        acc_rows=acc_rows,
        rows_total=rows_total,
        tiles_per_core=tiles_per_core,
    )

    def in_map(c, i):
        # Clamp so we never issue a fully out-of-bounds block DMA; clamped
        # (duplicate) blocks are masked out in-kernel via `valid <= 0`.
        return (jnp.minimum(c * tiles_per_core + i, num_blocks - 1), 0)

    in_spec = pl.BlockSpec((block_rows, LANES), in_map)
    acc_spec = pl.BlockSpec((1, acc_rows, LANES), lambda c, i: (c, 0, 0))

    loss_acc, w_acc = pl.pallas_call(
        kernel,
        out_shape=(
            jax.ShapeDtypeStruct((NUM_CORES, acc_rows, LANES), jnp.float32),
            jax.ShapeDtypeStruct((NUM_CORES, acc_rows, LANES), jnp.float32),
        ),
        grid_spec=pltpu.PrefetchScalarGridSpec(
            num_scalar_prefetch=0,
            grid=(NUM_CORES, tiles_per_core),
            in_specs=[in_spec, in_spec, in_spec],
            out_specs=[acc_spec, acc_spec],
        ),
        compiler_params=pltpu.CompilerParams(
            dimension_semantics=("parallel", "arbitrary")),
    )(z2, t2, w2)

    # Tiny epilogue: (2, acc_rows, 128) -> scalar, then divide (glue in JAX).
    return jnp.sum(loss_acc) / jnp.sum(w_acc)


def _reference(logits, labels, weights):
    w = weights.reshape(-1).astype(jnp.float32)
    z = logits.reshape(-1).astype(jnp.float32)
    t = labels.reshape(-1).astype(jnp.float32)
    loss = (w * jnp.maximum(z, 0.0) - w * z * t
            + w * jnp.log(1.0 + jnp.exp(-jnp.abs(z))))
    return jnp.sum(loss) / jnp.sum(w)


if __name__ == "__main__":
    key = jax.random.PRNGKey(0)
    k1, k2, k3 = jax.random.split(key, 3)

    B, C, H, W = 2, 4, 16, 16  # NCHW
    logits = jax.random.normal(k1, (B, C, H, W), dtype=jnp.float32) * 2.0
    labels = (jax.random.uniform(k2, (B, C, H, W)) > 0.5).astype(jnp.float32)
    weights = jax.random.uniform(k3, (B, C, H, W), dtype=jnp.float32) + 0.1

    out = weighted_bce_loss_2d(logits, labels, weights)
    out = jax.block_until_ready(out)

    ref = _reference(logits, labels, weights)
    assert jnp.allclose(out, ref, rtol=1e-5, atol=1e-5), (out, ref)

    print("KERNEL_OK")
</pallas_src>

<mosaic_0001>
module attributes {stable_mosaic.version = 11 : i64} {
  func.func @_wbce_kernel(%arg0: i32, %arg1: i32, %arg2: memref<16x128xf32, #tpu.memory_space<vmem>>, %arg3: memref<16x128xf32, #tpu.memory_space<vmem>>, %arg4: memref<16x128xf32, #tpu.memory_space<vmem>>, %arg5: memref<1x8x128xf32, #tpu.memory_space<vmem>>, %arg6: memref<1x8x128xf32, #tpu.memory_space<vmem>>) attributes {dimension_semantics = [#tpu.dimension_semantics<parallel>, #tpu.dimension_semantics<arbitrary>], iteration_bounds = array<i64: 2, 1>, scalar_prefetch = 0 : i64, scratch_operands = 0 : i64, tpu.core_type = #tpu.core_type<tc>, window_params = [{transform_indices = @transform_0, window_bounds = array<i64: 16, 128>}, {transform_indices = @transform_1, window_bounds = array<i64: 16, 128>}, {transform_indices = @transform_2, window_bounds = array<i64: 16, 128>}, {transform_indices = @transform_3, window_bounds = array<i64: 1, 8, 128>}, {transform_indices = @transform_4, window_bounds = array<i64: 1, 8, 128>}]} {
    %c0_i32 = arith.constant 0 : i32
    %0 = arith.cmpi eq, %arg1, %c0_i32 : i32
    %1 = arith.extui %0 : i1 to i32
    %c0_i32_0 = arith.constant 0 : i32
    %2 = arith.cmpi ne, %1, %c0_i32_0 : i32
    scf.if %2 {
      %cst_25 = arith.constant 0.000000e+00 : f32
      %42 = vector.broadcast %cst_25 : f32 to vector<1x8x128xf32>
      %c0_26 = arith.constant 0 : index
      %c0_27 = arith.constant 0 : index
      %c0_28 = arith.constant 0 : index
      %43 = vector.load %arg5[%c0_26, %c0_27, %c0_28] : memref<1x8x128xf32, #tpu.memory_space<vmem>>, vector<1x8x128xf32>
      tpu.vector_store %arg5[%c0_26, %c0_27, %c0_28], %42 {strides = array<i32>} : memref<1x8x128xf32, #tpu.memory_space<vmem>>, vector<1x8x128xf32>,
      %cst_29 = arith.constant 0.000000e+00 : f32
      %44 = vector.broadcast %cst_29 : f32 to vector<1x8x128xf32>
      %c0_30 = arith.constant 0 : index
      %c0_31 = arith.constant 0 : index
      %c0_32 = arith.constant 0 : index
      %45 = vector.load %arg6[%c0_30, %c0_31, %c0_32] : memref<1x8x128xf32, #tpu.memory_space<vmem>>, vector<1x8x128xf32>
      tpu.vector_store %arg6[%c0_30, %c0_31, %c0_32], %44 {strides = array<i32>} : memref<1x8x128xf32, #tpu.memory_space<vmem>>, vector<1x8x128xf32>,
    } else {
    }
    %c1_i32 = arith.constant 1 : i32
    %3 = arith.muli %arg0, %c1_i32 : i32
    %4 = arith.addi %3, %arg1 : i32
    %c16_i32 = arith.constant 16 : i32
    %5 = arith.muli %4, %c16_i32 : i32
    %c16_i32_1 = arith.constant 16 : i32
    %6 = arith.subi %c16_i32_1, %5 : i32
    %7 = tpu.iota {dimensions = array<i32: 0>} : vector<16x128xi32>
    %8 = vector.broadcast %6 : i32 to vector<16x128xi32>
    %9 = arith.cmpi slt, %7, %8 : vector<16x128xi32>
    %c0 = arith.constant 0 : index
    %c0_2 = arith.constant 0 : index
    %10 = vector.load %arg2[%c0, %c0_2] : memref<16x128xf32, #tpu.memory_space<vmem>>, vector<16x128xf32>
    %c0_3 = arith.constant 0 : index
    %c0_4 = arith.constant 0 : index
    %11 = vector.load %arg3[%c0_3, %c0_4] : memref<16x128xf32, #tpu.memory_space<vmem>>, vector<16x128xf32>
    %c0_5 = arith.constant 0 : index
    %c0_6 = arith.constant 0 : index
    %12 = vector.load %arg4[%c0_5, %c0_6] : memref<16x128xf32, #tpu.memory_space<vmem>>, vector<16x128xf32>
    %cst = arith.constant 0.000000e+00 : f32
    %13 = vector.broadcast %cst : f32 to vector<16x128xf32>
    %14 = arith.select %9, %12, %13 : vector<16x128xi1>, vector<16x128xf32>
    %cst_7 = arith.constant 0.000000e+00 : f32
    %15 = vector.broadcast %cst_7 : f32 to vector<16x128xf32>
    %16 = arith.maximumf %10, %15 : vector<16x128xf32>
    %17 = arith.mulf %10, %11 : vector<16x128xf32>
    %18 = arith.subf %16, %17 : vector<16x128xf32>
    %19 = math.absf %10 : vector<16x128xf32>
    %cst_8 = arith.constant 0.000000e+00 : f32
    %20 = vector.broadcast %cst_8 : f32 to vector<16x128xf32>
    %21 = arith.subf %20, %19 : vector<16x128xf32>
    %22 = math.exp %21 : vector<16x128xf32>
    %cst_9 = arith.constant 1.000000e+00 : f32
    %23 = vector.broadcast %cst_9 : f32 to vector<16x128xf32>
    %24 = arith.addf %23, %22 : vector<16x128xf32>
    %25 = math.log %24 : vector<16x128xf32>
    %26 = arith.addf %18, %25 : vector<16x128xf32>
    %27 = arith.mulf %14, %26 : vector<16x128xf32>
    %cst_10 = arith.constant 0.000000e+00 : f32
    %28 = vector.broadcast %cst_10 : f32 to vector<16x128xf32>
    %29 = arith.select %9, %27, %28 : vector<16x128xi1>, vector<16x128xf32>
    %30 = vector.shape_cast %29 : vector<16x128xf32> to vector<2x8x128xf32>
    %cst_11 = arith.constant dense<0.000000e+00> : vector<8x128xf32>
    %31 = vector.multi_reduction <add>, %30, %cst_11 [0] : vector<2x8x128xf32> to vector<8x128xf32>
    %32 = vector.shape_cast %14 : vector<16x128xf32> to vector<2x8x128xf32>
    %cst_12 = arith.constant dense<0.000000e+00> : vector<8x128xf32>
    %33 = vector.multi_reduction <add>, %32, %cst_12 [0] : vector<2x8x128xf32> to vector<8x128xf32>
    %c0_13 = arith.constant 0 : index
    %c0_14 = arith.constant 0 : index
    %c0_15 = arith.constant 0 : index
    %34 = vector.load %arg5[%c0_13, %c0_14, %c0_15] : memref<1x8x128xf32, #tpu.memory_space<vmem>>, vector<1x8x128xf32>
    %35 = vector.shape_cast %31 : vector<8x128xf32> to vector<1x8x128xf32>
    %36 = arith.addf %34, %35 : vector<1x8x128xf32>
    %c0_16 = arith.constant 0 : index
    %c0_17 = arith.constant 0 : index
    %c0_18 = arith.constant 0 : index
    %37 = vector.load %arg5[%c0_16, %c0_17, %c0_18] : memref<1x8x128xf32, #tpu.memory_space<vmem>>, vector<1x8x128xf32>
    tpu.vector_store %arg5[%c0_16, %c0_17, %c0_18], %36 {strides = array<i32>} : memref<1x8x128xf32, #tpu.memory_space<vmem>>, vector<1x8x128xf32>,
    %c0_19 = arith.constant 0 : index
    %c0_20 = arith.constant 0 : index
    %c0_21 = arith.constant 0 : index
    %38 = vector.load %arg6[%c0_19, %c0_20, %c0_21] : memref<1x8x128xf32, #tpu.memory_space<vmem>>, vector<1x8x128xf32>
    %39 = vector.shape_cast %33 : vector<8x128xf32> to vector<1x8x128xf32>
    %40 = arith.addf %38, %39 : vector<1x8x128xf32>
    %c0_22 = arith.constant 0 : index
    %c0_23 = arith.constant 0 : index
    %c0_24 = arith.constant 0 : index
    %41 = vector.load %arg6[%c0_22, %c0_23, %c0_24] : memref<1x8x128xf32, #tpu.memory_space<vmem>>, vector<1x8x128xf32>
    tpu.vector_store %arg6[%c0_22, %c0_23, %c0_24], %40 {strides = array<i32>} : memref<1x8x128xf32, #tpu.memory_space<vmem>>, vector<1x8x128xf32>,
    return
  }
  func.func @transform_0(%arg0: i32, %arg1: i32) -> (i32, i32) {
    %c1_i32 = arith.constant 1 : i32
    %0 = arith.muli %arg0, %c1_i32 : i32
    %1 = arith.addi %0, %arg1 : i32
    %c0_i32 = arith.constant 0 : i32
    %2 = arith.minsi %1, %c0_i32 : i32
    %c0_i32_0 = arith.constant 0 : i32
    %c0_i32_1 = arith.constant 0 : i32
    return %2, %c0_i32_0 : i32, i32
  }
  func.func @transform_1(%arg0: i32, %arg1: i32) -> (i32, i32) {
    %c1_i32 = arith.constant 1 : i32
    %0 = arith.muli %arg0, %c1_i32 : i32
    %1 = arith.addi %0, %arg1 : i32
    %c0_i32 = arith.constant 0 : i32
    %2 = arith.minsi %1, %c0_i32 : i32
    %c0_i32_0 = arith.constant 0 : i32
    %c0_i32_1 = arith.constant 0 : i32
    return %2, %c0_i32_0 : i32, i32
  }
  func.func @transform_2(%arg0: i32, %arg1: i32) -> (i32, i32) {
    %c1_i32 = arith.constant 1 : i32
    %0 = arith.muli %arg0, %c1_i32 : i32
    %1 = arith.addi %0, %arg1 : i32
    %c0_i32 = arith.constant 0 : i32
    %2 = arith.minsi %1, %c0_i32 : i32
    %c0_i32_0 = arith.constant 0 : i32
    %c0_i32_1 = arith.constant 0 : i32
    return %2, %c0_i32_0 : i32, i32
  }
  func.func @transform_3(%arg0: i32, %arg1: i32) -> (i32, i32, i32) {
    %c0_i32 = arith.constant 0 : i32
    %c0_i32_0 = arith.constant 0 : i32
    %c0_i32_1 = arith.constant 0 : i32
    return %arg0, %c0_i32, %c0_i32_0 : i32, i32, i32
  }
  func.func @transform_4(%arg0: i32, %arg1: i32) -> (i32, i32, i32) {
    %c0_i32 = arith.constant 0 : i32
    %c0_i32_0 = arith.constant 0 : i32
    %c0_i32_1 = arith.constant 0 : i32
    return %arg0, %c0_i32, %c0_i32_0 : i32, i32, i32
  }
}

</mosaic_0001>

<bundles_post_ra>
// kernel: weighted_bce_loss_2d.1
= control target key start
LH: loop header
LB: loop body
LE: loop exit
PB: predicated region body
PF: predicated region fallthrough
CT: control target
= control target key end

     0   :  { %s599_s15 = smov 0   ;;  %s601_s16 = smov 0   ;;  %s664_s0 = inlined_call_operand.vmem [shape: f32[16,128], index: 0, kind: input, shape index: {}]   ;;  %s665_s1 = inlined_call_operand.vmem [shape: f32[16,128], index: 1, kind: input, shape index: {}]   ;;  %s666_s2 = inlined_call_operand.vmem [shape: f32[16,128], index: 2, kind: input, shape index: {}]   ;;  %s667_s3 = inlined_call_operand.vmem [shape: f32[2,8,128], index: 3, kind: output, shape index: {0}]   ;;  %s668_s4 = inlined_call_operand.vmem [shape: f32[2,8,128], index: 4, kind: output, shape index: {1}]  }
   0x1   :  { %s603_s17 = smov 0  }
   0x2 LB: > { %s27_s18 = sadd.s32 1, %s568_s16  ;;  %p505_p0 = scmp.ge.s32.totalorder %s572_s17, 1  ;;  %s572_s17 = sphi %s603_s17, %s15_s17   ;;  %s568_s16 = sphi %s601_s16, %s674_s16   ;;  %s564_s15 = sphi %s599_s15, %s673_s15  }
   0x3   : > { %p29_p1 = scmp.ge.s32.totalorder %s27_s18, 2  ;;  %p236_p2 = scmp.lt.s32.totalorder %s572_s17, 3 }
   0x5   : > { %s676_s18 = smov (%p29_p1, %s27_s18), 0  ;;  %p237_p3 = pnand %p505_p0, %p236_p2 }
   0x6   : > { %p285_p4 = scmp.lt.s32.totalorder (!%p237_p3), %s564_s15, 0  ;;  %s514_s19 = sshll.u32 (!%p237_p3), %s564_s15, 4 }
   0x7   : > { %240 = sbr.rel (%p237_p3) target bundleno = 54 (0x36), region = 32  ;;  %p320_p5 = scmp.lt.s32.totalorder (!%p237_p3), %s564_s15, 1 }
   0x8   : > { %s336_s22 = ssub.s32 (!%p237_p3), 16, %s514_s19 }
   0xc   : > { %v337_v0 = vlaneseq  ;;  %s286_s20 = scalar_select %p285_p4, %s564_s15, 0  ;;  %v340_v3 = vstv %s336_s22 }
   0xd   : > { %s680_s15 = smov (!%p320_p5, %s564_s15), 1 }
   0xe   : > { %v338_v1 = vshrl.u32 %v337_v0, 7  ;;  %s506_s21 = sshll.u32 %s286_s20, 1  ;;  %s512_s30 = sshll.u32 %s680_s15, 3 }
   0xf   : > { %p288_p6 = scmp.lt.s32.totalorder %s506_s21, 1  ;;  %s327_s7 = scalar_lea.vmem %s668_s4, %s512_s30 }
  0x10   : > { %v339_v2 = vadd.s32 8, %v338_v1  ;;  %vm622_vm0 = vcmp.lt.s32.totalorder %v338_v1, %v340_v3  ;;  %s323_s13 = scalar_lea.vmem %s667_s3, %s512_s30 }
  0x11   : > { %s678_s21 = smov (!%p288_p6, %s506_s21), 1 }
  0x12   : > { %s507_s23 = sshll.u32 %s678_s21, 3  ;;  %vm626_vm1 = vcmp.lt.s32.totalorder %v339_v2, %v340_v3 }
  0x13   : > { %s291_s26 = scalar_lea.vmem %s664_s0, %s507_s23  ;;  %s315_s29 = scalar_lea.vmem %s666_s2, %s507_s23 }
  0x14   : > { %v343_v6 = vld [vmem:[%s291_s26] sm:$0xff]  ;;  %v344_v7 = vld [vmem:[%s291_s26 + $0x8] sm:$0xff]  ;;  %s303_s10 = scalar_lea.vmem %s665_s1, %s507_s23 }
  0x15   : > { %v347_v8 = vld [vmem:[%s315_s29] sm:$0xff]  ;;  %v348_v9 = vld [vmem:[%s315_s29 + $0x8] sm:$0xff]  ;;  %v357_v12 = vand.u32 2147483647, %v343_v6  ;;  %v358_v13 = vand.u32 2147483647, %v344_v7 }
  0x16   : > { %v349_v10 = vsel %vm622_vm0, %v347_v8, 0.0  ;;  %v350_v11 = vsel %vm626_vm1, %v348_v9, 0.0  ;;  %v345_v21 = vld [vmem:[%s303_s10] sm:$0xff]  ;;  %v346_v23 = vld [vmem:[%s303_s10 + $0x8] sm:$0xff]  ;;  %v351_v25 = vmax.f32 %v343_v6, 0.0  ;;  %v352_v27 = vmax.f32 %v344_v7, 0.0 }
  0x17   : > { %v378_v14 = vadd.f32 %v350_v11, %v349_v10  ;;  %v359_v15 = vsub.f32 0.0, %v357_v12  ;;  %v360_v16 = vsub.f32 0.0, %v358_v13  ;;  %v353_v26 = vmul.f32 %v345_v21, %v343_v6 }
  0x18   : > { %v354_v28 = vmul.f32 %v346_v23, %v344_v7 }
  0x19   : > { %v361_v17 = vmul.f32 1.442695, %v359_v15  ;;  %v363_v18 = vmul.f32 1.442695, %v360_v16  ;;  %384 = vst [vmem:[%s327_s7] sm:$0xff] %v378_v14  ;;  %v355_v29 = vsub.f32 %v351_v25, %v353_v26 }
  0x1a   : > { %v356_v31 = vsub.f32 %v352_v27, %v354_v28 }
  0x1b   : > { %542 = vpow2.f32 %v361_v17 }
  0x1c   : > { %544 = vpow2.f32 %v363_v18 }
  0x21   : > { %v543_v19 = vpop.eup %542 }
  0x22   : > { %v545_v20 = vpop.eup %544  ;;  %v365_v22 = vadd.f32 1.0, %v543_v19 }
  0x23   : > { %v366_v24 = vadd.f32 1.0, %v545_v20 }
  0x24   : > { %546 = vlog2.f32 %v365_v22 }
  0x25   : > { %548 = vlog2.f32 %v366_v24 }
  0x2a   : > { %v547_v30 = vpop.eup %546 }
  0x2b   : > { %v549_v32 = vpop.eup %548  ;;  %v368_v33 = vmul.f32 0.6931472, %v547_v30 }
  0x2c   : > { %v370_v34 = vmul.f32 0.6931472, %v549_v32 }
  0x2d   : > { %v371_v35 = vadd.f32 %v368_v33, %v355_v29 }
  0x2e   : > { %v372_v36 = vadd.f32 %v370_v34, %v356_v31 }
  0x2f   : > { %v373_v37 = vmul.f32 %v371_v35, %v349_v10 }
  0x30   : > { %v374_v38 = vmul.f32 %v372_v36, %v350_v11 }
  0x31   : > { %v375_v39 = vsel %vm622_vm0, %v373_v37, 0.0 }
  0x32   : > { %v376_v40 = vsel %vm626_vm1, %v374_v38, 0.0 }
  0x33   : > { %v377_v41 = vadd.f32 %v376_v40, %v375_v39 }
  0x35   : > { %381 = vst [vmem:[%s323_s13] sm:$0xff] %v377_v41 }
  0x36 PF: > { %s15_s17 = sadd.s32 1, %s572_s17   ;;  %s673_s15 = smov %s568_s16 }
  0x37   : > { %p12_p7 = scmp.ge.s32.totalorder %s15_s17, 4   ;;  %s674_s16 = smov %s676_s18 }
  0x39   :  { %14 = sbr.rel (!%p12_p7) target bundleno = 2 (0x2), region = 84 }

</bundles_post_ra>
